<compile_context>
chip_gen: v7x
topology: tpu7x:2x2x1
jax: 0.10.0
libtpu: 0.0.40
codegen_flags: <defaults>
</compile_context>

<pallas_src>
import jax
import jax.numpy as jnp
from jax.experimental import pallas as pl
from jax.experimental.pallas import tpu as pltpu


def _scale_bias_kernel(x_ref, w_ref, b_ref, o_ref):
    # One fused full-tile FMA: (br, bc) * (br, 1) + (br, 1), lane-dense store.
    o_ref[...] = x_ref[...] * w_ref[...] + b_ref[...]


def _round_up(x, q):
    return ((x + q - 1) // q) * q


def grouped_conv1d_k1(
    x,
    w,
    b,
    *,
    row_block_target=256,
    col_block_target=8192,
    min_pallas_elems=1 << 20,
    force_pallas=False,
):
    """Forward pass of Conv1d(in=2, out=2, kernel_size=1, groups=2).

    x: (N, C, L) f32 (PyTorch NCL layout)
    w: (C,) f32  == conv.weight[:, 0, 0]
    b: (C,) f32  == conv.bias
    returns (N, C, L):  out[n, c, l] = w[c] * x[n, c, l] + b[c]
    """
    N, C, L = x.shape
    rows, cols = N * C, L

    w = w.astype(x.dtype)
    b = b.astype(x.dtype)

    # Tiny inputs: a single XLA fusion beats pallas_call launch + DMA setup.
    if not force_pallas and rows * cols < min_pallas_elems:
        return x * w[None, :, None] + b[None, :, None]

    # Free (row-major) reshape: channel becomes (row % C); L stays on lanes.
    x2 = x.reshape(rows, cols)

    # Fixed (8,128)-aligned blocks, clamped to the (rounded-up) array extent.
    br = min(_round_up(row_block_target, 8), _round_up(rows, 8))
    bc = min(_round_up(col_block_target, 128), _round_up(cols, 128))
    grid = (pl.cdiv(rows, br), pl.cdiv(cols, bc))

    # Per-row scale / bias. br is a multiple of 8 (hence of C=2), so every
    # row block sees the identical (br, 1) period tile -> fetch it once.
    if br % C == 0:
        reps = br // C
        w_tile = jnp.tile(w, reps).reshape(br, 1)
        b_tile = jnp.tile(b, reps).reshape(br, 1)
        wb_index = lambda i, j: (0, 0)
    else:
        # General-C fallback: full per-row columns indexed by row block.
        w_tile = jnp.tile(w, rows // C).reshape(rows, 1)
        b_tile = jnp.tile(b, rows // C).reshape(rows, 1)
        wb_index = lambda i, j: (i, 0)

    out2 = pl.pallas_call(
        _scale_bias_kernel,
        out_shape=jax.ShapeDtypeStruct((rows, cols), x.dtype),
        grid_spec=pltpu.PrefetchScalarGridSpec(
            num_scalar_prefetch=0,
            grid=grid,
            in_specs=[
                pl.BlockSpec((br, bc), lambda i, j: (i, j)),  # x tile
                pl.BlockSpec((br, 1), wb_index),              # per-row scale
                pl.BlockSpec((br, 1), wb_index),              # per-row bias
            ],
            out_specs=pl.BlockSpec((br, bc), lambda i, j: (i, j)),
        ),
        compiler_params=pltpu.CompilerParams(
            dimension_semantics=("parallel", "parallel"),
            vmem_limit_bytes=48 << 20,
        ),
    )(x2, w_tile, b_tile)

    return out2.reshape(N, C, L)


if __name__ == "__main__":
    key = jax.random.PRNGKey(0)
    kx, kb, kx2, kx3 = jax.random.split(key, 4)

    # Parameters, deterministic:
    #   init_weights() sets weight[0,0,0]=2.0, weight[1,0,0]=4.0  -> w = [2, 4]
    #   bias keeps PyTorch's default U(-1, 1) (fan_in = 1); drawn with fixed key.
    C = 2
    w = jnp.array([2.0, 4.0], dtype=jnp.float32)
    b = jax.random.uniform(kb, (C,), dtype=jnp.float32, minval=-1.0, maxval=1.0)

    def ref_fn(x):
        return x * w[None, :, None] + b[None, :, None]

    # 1) The small shape this module implies: (batch=2, channels=2, length=16).
    #    Goes through the XLA fast path (pallas would be pure overhead here).
    N1, L1 = 2, 16
    x1 = jax.random.normal(kx, (N1, C, L1), dtype=jnp.float32)
    out1 = jax.block_until_ready(grouped_conv1d_k1(x1, w, b))
    assert out1.shape == (N1, C, L1)
    assert jnp.allclose(out1, ref_fn(x1), atol=1e-6, rtol=1e-6)

    # 2) Pallas path, lane-dense single-block-per-axis case.
    N2, L2 = 16, 4096
    x2 = jax.random.normal(kx2, (N2, C, L2), dtype=jnp.float32)
    out2 = jax.block_until_ready(grouped_conv1d_k1(x2, w, b, force_pallas=True))
    assert jnp.allclose(out2, ref_fn(x2), atol=1e-6, rtol=1e-6)

    # 3) Pallas path, multi-step cdiv grid with ragged edge blocks on both
    #    axes (rows=40 with br=16, cols=1000 with bc=256) to exercise masking.
    N3, L3 = 20, 1000
    x3 = jax.random.normal(kx3, (N3, C, L3), dtype=jnp.float32)
    out3 = jax.block_until_ready(
        grouped_conv1d_k1(
            x3, w, b,
            row_block_target=16, col_block_target=256, force_pallas=True,
        )
    )
    assert jnp.allclose(out3, ref_fn(x3), atol=1e-6, rtol=1e-6)

    print("KERNEL_OK")
</pallas_src>

<mosaic_0001>
module attributes {stable_mosaic.version = 11 : i64} {
  func.func @_scale_bias_kernel(%arg0: i32, %arg1: i32, %arg2: memref<32x4096xf32, #tpu.memory_space<vmem>>, %arg3: memref<32x1xf32, #tpu.memory_space<vmem>>, %arg4: memref<32x1xf32, #tpu.memory_space<vmem>>, %arg5: memref<32x4096xf32, #tpu.memory_space<vmem>>) attributes {dimension_semantics = [#tpu.dimension_semantics<parallel>, #tpu.dimension_semantics<parallel>], iteration_bounds = array<i64: 1, 1>, scalar_prefetch = 0 : i64, scratch_operands = 0 : i64, tpu.core_type = #tpu.core_type<tc>, window_params = [{transform_indices = @transform_0, window_bounds = array<i64: 32, 4096>}, {pipeline_mode = #tpu.pipeline_mode<synchronous>, transform_indices = @transform_1, window_bounds = array<i64: 32, 1>}, {pipeline_mode = #tpu.pipeline_mode<synchronous>, transform_indices = @transform_2, window_bounds = array<i64: 32, 1>}, {transform_indices = @transform_3, window_bounds = array<i64: 32, 4096>}]} {
    %c0 = arith.constant 0 : index
    %c0_0 = arith.constant 0 : index
    %0 = vector.load %arg2[%c0, %c0_0] : memref<32x4096xf32, #tpu.memory_space<vmem>>, vector<32x4096xf32>
    %c0_1 = arith.constant 0 : index
    %c0_2 = arith.constant 0 : index
    %1 = vector.load %arg3[%c0_1, %c0_2] : memref<32x1xf32, #tpu.memory_space<vmem>>, vector<32x1xf32>
    %2 = vector.broadcast %1 : vector<32x1xf32> to vector<32x4096xf32>
    %3 = arith.mulf %0, %2 : vector<32x4096xf32>
    %c0_3 = arith.constant 0 : index
    %c0_4 = arith.constant 0 : index
    %4 = vector.load %arg4[%c0_3, %c0_4] : memref<32x1xf32, #tpu.memory_space<vmem>>, vector<32x1xf32>
    %5 = vector.broadcast %4 : vector<32x1xf32> to vector<32x4096xf32>
    %6 = arith.addf %3, %5 : vector<32x4096xf32>
    %c0_5 = arith.constant 0 : index
    %c0_6 = arith.constant 0 : index
    %7 = vector.load %arg5[%c0_5, %c0_6] : memref<32x4096xf32, #tpu.memory_space<vmem>>, vector<32x4096xf32>
    tpu.vector_store %arg5[%c0_5, %c0_6], %6 {strides = array<i32>} : memref<32x4096xf32, #tpu.memory_space<vmem>>, vector<32x4096xf32>,
    return
  }
  func.func @transform_0(%arg0: i32, %arg1: i32) -> (i32, i32) {
    %c0_i32 = arith.constant 0 : i32
    return %arg0, %arg1 : i32, i32
  }
  func.func @transform_1(%arg0: i32, %arg1: i32) -> (i32, i32) {
    %c0_i32 = arith.constant 0 : i32
    %c0_i32_0 = arith.constant 0 : i32
    %c0_i32_1 = arith.constant 0 : i32
    return %c0_i32, %c0_i32_0 : i32, i32
  }
  func.func @transform_2(%arg0: i32, %arg1: i32) -> (i32, i32) {
    %c0_i32 = arith.constant 0 : i32
    %c0_i32_0 = arith.constant 0 : i32
    %c0_i32_1 = arith.constant 0 : i32
    return %c0_i32, %c0_i32_0 : i32, i32
  }
  func.func @transform_3(%arg0: i32, %arg1: i32) -> (i32, i32) {
    %c0_i32 = arith.constant 0 : i32
    return %arg0, %arg1 : i32, i32
  }
}

</mosaic_0001>

<bundles_post_ra>
// kernel: tpu_custom_call.1
= control target key start
LH: loop header
LB: loop body
LE: loop exit
PB: predicated region body
PF: predicated region fallthrough
CT: control target
= control target key end

     0   :  { %8 = vsyncpa [#allocation3], 0  ;;  %s1086_s0 = inlined_call_operand.hbm [shape: f32[32,4096], index: 0, kind: input, shape index: {}]   ;;  %s1087_s1 = inlined_call_operand.vmem [shape: f32[32,1], index: 1, kind: input, shape index: {}]   ;;  %s1088_s2 = inlined_call_operand.vmem [shape: f32[32,1], index: 2, kind: input, shape index: {}]   ;;  %s1089_s3 = inlined_call_operand.hbm [shape: f32[32,4096], index: 3, kind: output, shape index: {}]  }
   0x1   :  { %9 = vsyncpa [#allocation4], 0  ;;  %s661_s12 = smov [#allocation2]   ;;  %s613_s16 = scalar_lea.hbm %s1086_s0, 16384 }
   0x2   :  { %s15_s13 = sshll.u32 %s661_s12, 4  ;;  %p614_p0 = scmp.ne.s32.totalorder %s1086_s0, %s613_s16  ;;  %s16_s13 = int_to_ptr.vmem [resolvable:$true] %s15_s13 }
   0x3   :  { %p617_p1 = scmp.lt.u32.totalorder %s613_s16, %s1086_s0 }
   0x5   :  { %p619_p2 = pnand %p617_p1, %p614_p0 }
   0x7   :  { %622 = shalt.err (!%p619_p2)
}
   0x8   :  { %s623_s21 = scalar_lea.vmem %s16_s13, 16384  ;;  %p628_p4 = scmp.lt.s32.totalorder %s16_s13, %s16_s13 }
   0x9   :  { %p624_p3 = scmp.ne.s32.totalorder %s16_s13, %s623_s21  ;;  %p629_p5 = scmp.lt.s32.totalorder %s623_s21, %s623_s21 }
   0xb   :  { %p630_p6 = por %p629_p5, %p628_p4 }
   0xd   :  { %p631_p7 = pnand %p630_p6, %p624_p3 }
   0xf   :  { %634 = shalt.err (!%p631_p7)
}
  0x10   :  { %s662_s22 = smov 4096   ;;  %s663_s23 = smov 256  }
  0x11   :  { %21 = dma.hbm_to_vmem [thread:$0]  %s1086_s0, 16384, %s16_s13, [#allocation3], %s662_s22, %s662_s22, %s663_s23  }
  0x12   :  { %657 = dma.done.wait [#allocation3], 16384  }
  0x13   :  { %658 = vsyncadd [#allocation3], 4294950912  ;;  %v664_v0 = vmov 0   ;;  %v159_v1 = vld [vmem:[%s1087_s1 + $0x10] sm:$0xff]  ;;  %v157_v2 = vld [vmem:[%s1087_s1] sm:$0xff] }
  0x14   :  { %612 = vset.pattern.permute.xlu1 %v664_v0  ;;  %611 = vset.pattern.permute.xlu0 %v664_v0  ;;  %v160_v3 = vld [vmem:[%s1087_s1 + $0x18] sm:$0xff]  ;;  %v158_v4 = vld [vmem:[%s1087_s1 + $0x8] sm:$0xff]  ;;  %v309_v6 = vld [vmem:[%s1088_s2] sm:$0xff]  ;;  %s665_s1 = smov [#allocation5]  }
  0x15   :  { %173 = vperm.xlu1 %612, %v159_v1   ;;  %163 = vperm.xlu0 %611, %v157_v2   ;;  %v310_v5 = vld [vmem:[%s1088_s2 + $0x8] sm:$0xff]  ;;  %v312_v7 = vld [vmem:[%s1088_s2 + $0x18] sm:$0xff]  ;;  %v311_v8 = vld [vmem:[%s1088_s2 + $0x10] sm:$0xff]  ;;  %s594_s2 = sshll.u32 %s665_s1, 4  ;;  %s595_s2 = int_to_ptr.vmem [resolvable:$true] %s594_s2 }
  0x16   :  { %v29_v9 = vld [vmem:[#allocation2] sm:$0xff]  ;;  %v30_v10 = vld [vmem:[#allocation2 + $0x8] sm:$0xff]  ;;  %v31_v11 = vld [vmem:[#allocation2 + $0x10] sm:$0xff]  ;;  %s635_s14 = scalar_lea.vmem %s595_s2, 16384  ;;  %p640_p9 = scmp.lt.s32.totalorder %s595_s2, %s595_s2 }
  0x17   :  { %v32_v12 = vld [vmem:[#allocation2 + $0x18] sm:$0xff]  ;;  %v33_v13 = vld [vmem:[#allocation2 + $0x20] sm:$0xff]  ;;  %v34_v14 = vld [vmem:[#allocation2 + $0x28] sm:$0xff]  ;;  %p636_p8 = scmp.ne.s32.totalorder %s595_s2, %s635_s14  ;;  %p641_p10 = scmp.lt.s32.totalorder %s635_s14, %s635_s14 }
  0x18   :  { %v35_v15 = vld [vmem:[#allocation2 + $0x30] sm:$0xff]  ;;  %v36_v16 = vld [vmem:[#allocation2 + $0x38] sm:$0xff]  ;;  %v37_v17 = vld [vmem:[#allocation2 + $0x40] sm:$0xff] }
  0x19   :  { %178 = vperm.xlu1 %612, %v160_v3   ;;  %168 = vperm.xlu0 %611, %v158_v4   ;;  %v38_v18 = vld [vmem:[#allocation2 + $0x48] sm:$0xff]  ;;  %v39_v19 = vld [vmem:[#allocation2 + $0x50] sm:$0xff]  ;;  %v40_v20 = vld [vmem:[#allocation2 + $0x58] sm:$0xff]  ;;  %p642_p11 = por %p641_p10, %p640_p9 }
  0x1a   :  { %v41_v21 = vld [vmem:[#allocation2 + $0x60] sm:$0xff]  ;;  %v42_v22 = vld [vmem:[#allocation2 + $0x68] sm:$0xff]  ;;  %v43_v23 = vld [vmem:[#allocation2 + $0x70] sm:$0xff] }
  0x1b   :  { %v44_v24 = vld [vmem:[#allocation2 + $0x78] sm:$0xff]  ;;  %v45_v26 = vld [vmem:[#allocation2 + $0x80] sm:$0xff]  ;;  %v46_v27 = vld [vmem:[#allocation2 + $0x88] sm:$0xff]  ;;  %p643_p12 = pnand %p642_p11, %p636_p8 }
  0x1c   :  { %v47_v28 = vld [vmem:[#allocation2 + $0x90] sm:$0xff]  ;;  %v48_v29 = vld [vmem:[#allocation2 + $0x98] sm:$0xff]  ;;  %v49_v30 = vld [vmem:[#allocation2 + $0xa0] sm:$0xff] }
  0x1d   :  { %320 = vperm.xlu1 %612, %v310_v5   ;;  %315 = vperm.xlu0 %611, %v309_v6   ;;  %v50_v31 = vld [vmem:[#allocation2 + $0xa8] sm:$0xff]  ;;  %v51_v32 = vld [vmem:[#allocation2 + $0xb0] sm:$0xff]  ;;  %v52_v33 = vld [vmem:[#allocation2 + $0xb8] sm:$0xff] }
  0x1e   :  { %v53_v39 = vld [vmem:[#allocation2 + $0xc0] sm:$0xff]  ;;  %v54_v40 = vld [vmem:[#allocation2 + $0xc8] sm:$0xff]  ;;  %v55_v41 = vld [vmem:[#allocation2 + $0xd0] sm:$0xff] }
  0x1f   :  { %v56_v42 = vld [vmem:[#allocation2 + $0xd8] sm:$0xff]  ;;  %v57_v47 = vld [vmem:[#allocation2 + $0xe0] sm:$0xff]  ;;  %v58_v48 = vld [vmem:[#allocation2 + $0xe8] sm:$0xff] }
  0x20   :  { %v59_v49 = vld [vmem:[#allocation2 + $0xf0] sm:$0xff]  ;;  %v60_v50 = vld [vmem:[#allocation2 + $0xf8] sm:$0xff]  ;;  %v61_v59 = vld [vmem:[#allocation2 + $0x100] sm:$0xff] }
  0x21   :  { %330 = vperm.xlu1 %612, %v312_v7   ;;  %325 = vperm.xlu0 %611, %v311_v8   ;;  %v62_v60 = vld [vmem:[#allocation2 + $0x108] sm:$0xff]  ;;  %v63_v61 = vld [vmem:[#allocation2 + $0x110] sm:$0xff]  ;;  %v64_v62 = vld [vmem:[#allocation2 + $0x118] sm:$0xff] }
  0x22   :  { %v65_v3 = vld [vmem:[#allocation2 + $0x120] sm:$0xff]  ;;  %v66_v4 = vld [vmem:[#allocation2 + $0x128] sm:$0xff]  ;;  %v67_v5 = vld [vmem:[#allocation2 + $0x130] sm:$0xff] }
  0x23   :  { %v68_v6 = vld [vmem:[#allocation2 + $0x138] sm:$0xff] }
  0x94   :  { %v725_v25 = vpop.permute.xlu0 %163  ;;  %v739_v38 = vpop.permute.xlu1 %173 }
  0x95   :  { %v728_v34 = vmul.f32 %v725_v25, %v29_v9  ;;  %v731_v35 = vmul.f32 %v725_v25, %v30_v10  ;;  %v734_v36 = vmul.f32 %v725_v25, %v31_v11  ;;  %v737_v37 = vmul.f32 %v725_v25, %v32_v12  ;;  %1092 = vst [vmem:[#allocation8_spill] sm:$0xff] %v739_v38  ;;  %v69_v12 = vld [vmem:[#allocation2 + $0x140] sm:$0xff] }
  0x96   :  { %v742_v43 = vmul.f32 %v725_v25, %v33_v13  ;;  %v745_v44 = vmul.f32 %v725_v25, %v34_v14  ;;  %v748_v45 = vmul.f32 %v725_v25, %v35_v15  ;;  %v751_v46 = vmul.f32 %v725_v25, %v36_v16  ;;  %v70_v13 = vld [vmem:[#allocation2 + $0x148] sm:$0xff]  ;;  %v71_v14 = vld [vmem:[#allocation2 + $0x150] sm:$0xff] }
  0x97   :  { %v754_v51 = vmul.f32 %v725_v25, %v37_v17  ;;  %v757_v52 = vmul.f32 %v725_v25, %v38_v18  ;;  %v760_v53 = vmul.f32 %v725_v25, %v39_v19  ;;  %v763_v54 = vmul.f32 %v725_v25, %v40_v20  ;;  %v72_v19 = vld [vmem:[#allocation2 + $0x158] sm:$0xff]  ;;  %v73_v20 = vld [vmem:[#allocation2 + $0x160] sm:$0xff] }
  0x98   :  { %v766_v55 = vmul.f32 %v725_v25, %v41_v21  ;;  %v769_v56 = vmul.f32 %v725_v25, %v42_v22  ;;  %v772_v57 = vmul.f32 %v725_v25, %v43_v23  ;;  %v775_v58 = vmul.f32 %v725_v25, %v44_v24  ;;  %v801_v11 = vpop.permute.xlu0 %168  ;;  %v74_v21 = vld [vmem:[#allocation2 + $0x168] sm:$0xff] }
  0x99   :  { %v778_v63 = vmul.f32 %v725_v25, %v45_v26  ;;  %v781_v0 = vmul.f32 %v725_v25, %v46_v27  ;;  %v784_v1 = vmul.f32 %v725_v25, %v47_v28  ;;  %v787_v2 = vmul.f32 %v725_v25, %v48_v29  ;;  %v827_v27 = vpop.permute.xlu1 %178  ;;  %v75_v28 = vld [vmem:[#allocation2 + $0x170] sm:$0xff]  ;;  %v76_v29 = vld [vmem:[#allocation2 + $0x178] sm:$0xff] }
  0x9a   :  { %1093 = vst [vmem:[#allocation9_spill] sm:$0xff] %v772_v57  ;;  %1094 = vst [vmem:[#allocation10_spill] sm:$0xff] %v775_v58  ;;  %v790_v7 = vmul.f32 %v725_v25, %v49_v30  ;;  %v793_v8 = vmul.f32 %v725_v25, %v50_v31  ;;  %v796_v9 = vmul.f32 %v725_v25, %v51_v32  ;;  %v77_v30 = vld [vmem:[#allocation2 + $0x180] sm:$0xff]  ;;  %v78_v31 = vld [vmem:[#allocation2 + $0x188] sm:$0xff] }
  0x9b   :  { %1095 = vst [vmem:[#allocation11_spill] sm:$0xff] %v778_v63  ;;  %1096 = vst [vmem:[#allocation12_spill] sm:$0xff] %v781_v0  ;;  %v799_v10 = vmul.f32 %v725_v25, %v52_v33  ;;  %v804_v15 = vmul.f32 %v725_v25, %v53_v39  ;;  %v807_v16 = vmul.f32 %v725_v25, %v54_v40  ;;  %v79_v32 = vld [vmem:[#allocation2 + $0x190] sm:$0xff]  ;;  %v80_v33 = vld [vmem:[#allocation2 + $0x198] sm:$0xff] }
  0x9c   :  { %1097 = vst [vmem:[#allocation13_spill] sm:$0xff] %v784_v1  ;;  %1098 = vst [vmem:[#allocation14_spill] sm:$0xff] %v787_v2  ;;  %v810_v17 = vmul.f32 %v725_v25, %v55_v41  ;;  %v813_v18 = vmul.f32 %v725_v25, %v56_v42  ;;  %v816_v22 = vmul.f32 %v725_v25, %v57_v47  ;;  %v81_v47 = vld [vmem:[#allocation2 + $0x1a0] sm:$0xff] }
  0x9d   :  { %1099 = vst [vmem:[#allocation15_spill] sm:$0xff] %v790_v7  ;;  %1100 = vst [vmem:[#allocation16_spill] sm:$0xff] %v793_v8  ;;  %v819_v23 = vmul.f32 %v725_v25, %v58_v48  ;;  %v822_v24 = vmul.f32 %v725_v25, %v59_v49  ;;  %v825_v26 = vmul.f32 %v725_v25, %v60_v50  ;;  %v82_v48 = vld [vmem:[#allocation2 + $0x1a8] sm:$0xff]  ;;  %v83_v25 = vld [vmem:[#allocation2 + $0x1b0] sm:$0xff] }
  0x9e   :  { %1101 = vst [vmem:[#allocation17_spill] sm:$0xff] %v796_v9  ;;  %1102 = vst [vmem:[#allocation18_spill] sm:$0xff] %v799_v10  ;;  %v213_v39 = vmul.f32 %v801_v11, %v61_v59  ;;  %v214_v40 = vmul.f32 %v801_v11, %v62_v60  ;;  %v215_v41 = vmul.f32 %v801_v11, %v63_v61  ;;  %v86_v59 = vld [vmem:[#allocation2 + $0x1c8] sm:$0xff] }
  0x9f   :  { %1103 = vst [vmem:[#allocation19_spill] sm:$0xff] %v804_v15  ;;  %1104 = vst [vmem:[#allocation20_spill] sm:$0xff] %v807_v16  ;;  %v216_v42 = vmul.f32 %v801_v11, %v64_v62  ;;  %v217_v49 = vmul.f32 %v801_v11, %v65_v3  ;;  %v218_v50 = vmul.f32 %v801_v11, %v66_v4  ;;  %v89_v3 = vld [vmem:[#allocation2 + $0x1e0] sm:$0xff]  ;;  %v90_v16 = vld [vmem:[#allocation2 + $0x1e8] sm:$0xff] }
  0xa0   :  { %1105 = vst [vmem:[#allocation21_spill] sm:$0xff] %v810_v17  ;;  %1106 = vst [vmem:[#allocation22_spill] sm:$0xff] %v813_v18  ;;  %v219_v38 = vmul.f32 %v801_v11, %v67_v5  ;;  %v221_v60 = vmul.f32 %v801_v11, %v69_v12  ;;  %v222_v61 = vmul.f32 %v801_v11, %v70_v13  ;;  %v88_v18 = vld [vmem:[#allocation2 + $0x1d8] sm:$0xff]  ;;  %v91_v15 = vld [vmem:[#allocation2 + $0x1f0] sm:$0xff] }
  0xa1   :  { %1107 = vst [vmem:[#allocation23_spill] sm:$0xff] %v816_v22  ;;  %1108 = vst [vmem:[#allocation24_spill] sm:$0xff] %v819_v23  ;;  %v223_v62 = vmul.f32 %v801_v11, %v71_v14  ;;  %v224_v23 = vmul.f32 %v801_v11, %v72_v19  ;;  %v87_v22 = vld [vmem:[#allocation2 + $0x1d0] sm:$0xff]  ;;  %v225_v4 = vmul.f32 %v801_v11, %v73_v20  ;;  %v92_v12 = vld [vmem:[#allocation2 + $0x1f8] sm:$0xff] }
  0xa2   :  { %1109 = vst [vmem:[#allocation25_spill] sm:$0xff] %v822_v24  ;;  %1110 = vst [vmem:[#allocation26_spill] sm:$0xff] %v825_v26  ;;  %v84_v26 = vld [vmem:[#allocation2 + $0x1b8] sm:$0xff]  ;;  %v85_v24 = vld [vmem:[#allocation2 + $0x1c0] sm:$0xff]  ;;  %v226_v5 = vmul.f32 %v801_v11, %v74_v21  ;;  %v228_v17 = vmul.f32 %v801_v11, %v76_v29  ;;  %v229_v13 = vmul.f32 %v801_v11, %v77_v30  ;;  %v321_v29 = vpop.permute.xlu1 %320 }
  0xa3   :  { %1111 = vst [vmem:[#allocation27_spill] sm:$0xff] %v827_v27  ;;  %v220_v27 = vmul.f32 %v801_v11, %v68_v6  ;;  %v227_v6 = vmul.f32 %v801_v11, %v75_v28  ;;  %v230_v14 = vmul.f32 %v801_v11, %v78_v31  ;;  %v231_v19 = vmul.f32 %v801_v11, %v79_v32 }
  0xa4   :  { %v232_v10 = vmul.f32 %v801_v11, %v80_v33  ;;  %v233_v9 = vmul.f32 %v801_v11, %v81_v47  ;;  %v234_v20 = vmul.f32 %v801_v11, %v82_v48  ;;  %v235_v21 = vmul.f32 %v801_v11, %v83_v25 }
  0xa5   :  { %v236_v28 = vmul.f32 %v801_v11, %v84_v26  ;;  %v237_v8 = vmul.f32 %v801_v11, %v85_v24  ;;  %v238_v7 = vmul.f32 %v801_v11, %v86_v59  ;;  %v239_v30 = vmul.f32 %v801_v11, %v87_v22 }
  0xa6   :  { %v240_v31 = vmul.f32 %v801_v11, %v88_v18  ;;  %v241_v32 = vmul.f32 %v801_v11, %v89_v3  ;;  %v242_v33 = vmul.f32 %v801_v11, %v90_v16  ;;  %v243_v47 = vmul.f32 %v801_v11, %v91_v15 }
  0xa7   :  { %v244_v48 = vmul.f32 %v801_v11, %v92_v12  ;;  %v365_v25 = vadd.f32 %v321_v29, %v213_v39  ;;  %v366_v2 = vadd.f32 %v321_v29, %v214_v40  ;;  %v367_v26 = vadd.f32 %v321_v29, %v215_v41  ;;  %v128_v12 = vld [vmem:[#allocation2 + $0x318] sm:$0xff] }
  0xa8   :  { %v368_v1 = vadd.f32 %v321_v29, %v216_v42  ;;  %v369_v0 = vadd.f32 %v321_v29, %v217_v49  ;;  %v370_v24 = vadd.f32 %v321_v29, %v218_v50  ;;  %v371_v63 = vadd.f32 %v321_v29, %v219_v38 }
  0xa9   :  { %v372_v59 = vadd.f32 %v321_v29, %v220_v27  ;;  %v373_v58 = vadd.f32 %v321_v29, %v221_v60  ;;  %v374_v22 = vadd.f32 %v321_v29, %v222_v61  ;;  %v375_v57 = vadd.f32 %v321_v29, %v223_v62  ;;  %493 = vst [vmem:[#allocation5 + $0x100] sm:$0xff] %v365_v25 }
  0xaa   :  { %v376_v18 = vadd.f32 %v321_v29, %v224_v23  ;;  %494 = vst [vmem:[#allocation5 + $0x108] sm:$0xff] %v366_v2  ;;  %495 = vst [vmem:[#allocation5 + $0x110] sm:$0xff] %v367_v26  ;;  %v377_v16 = vadd.f32 %v321_v29, %v225_v4  ;;  %v378_v15 = vadd.f32 %v321_v29, %v226_v5  ;;  %v1120_v26 = vld [vmem:[#allocation17_spill] sm:$0xff] }
  0xab   :  { %496 = vst [vmem:[#allocation5 + $0x118] sm:$0xff] %v368_v1  ;;  %v379_v3 = vadd.f32 %v321_v29, %v227_v6  ;;  %v380_v11 = vadd.f32 %v321_v29, %v228_v17  ;;  %497 = vst [vmem:[#allocation5 + $0x120] sm:$0xff] %v369_v0  ;;  %v381_v39 = vadd.f32 %v321_v29, %v229_v13  ;;  %v861_v0 = vpop.permute.xlu0 %315  ;;  %v127_v6 = vld [vmem:[#allocation2 + $0x310] sm:$0xff]  ;;  %v1114_v13 = vld [vmem:[#allocation11_spill] sm:$0xff] }
  0xac   :  { %498 = vst [vmem:[#allocation5 + $0x128] sm:$0xff] %v370_v24  ;;  %499 = vst [vmem:[#allocation5 + $0x130] sm:$0xff] %v371_v63  ;;  %v382_v40 = vadd.f32 %v321_v29, %v230_v14  ;;  %v383_v38 = vadd.f32 %v321_v29, %v231_v19  ;;  %v384_v27 = vadd.f32 %v321_v29, %v232_v10  ;;  %v1115_v14 = vld [vmem:[#allocation12_spill] sm:$0xff]  ;;  %v1116_v19 = vld [vmem:[#allocation13_spill] sm:$0xff] }
  0xad   :  { %500 = vst [vmem:[#allocation5 + $0x138] sm:$0xff] %v372_v59  ;;  %501 = vst [vmem:[#allocation5 + $0x140] sm:$0xff] %v373_v58  ;;  %v385_v23 = vadd.f32 %v321_v29, %v233_v9  ;;  %v386_v2 = vadd.f32 %v321_v29, %v234_v20  ;;  %v387_v41 = vadd.f32 %v321_v29, %v235_v21  ;;  %v1117_v21 = vld [vmem:[#allocation14_spill] sm:$0xff] }
  0xae   :  { %502 = vst [vmem:[#allocation5 + $0x148] sm:$0xff] %v374_v22  ;;  %503 = vst [vmem:[#allocation5 + $0x150] sm:$0xff] %v375_v57  ;;  %v388_v1 = vadd.f32 %v321_v29, %v236_v28  ;;  %v389_v63 = vadd.f32 %v321_v29, %v237_v8  ;;  %v390_v17 = vadd.f32 %v321_v29, %v238_v7  ;;  %v1121_v59 = vld [vmem:[#allocation18_spill] sm:$0xff] }
  0xaf   :  { %504 = vst [vmem:[#allocation5 + $0x158] sm:$0xff] %v376_v18  ;;  %505 = vst [vmem:[#allocation5 + $0x160] sm:$0xff] %v377_v16  ;;  %v391_v42 = vadd.f32 %v321_v29, %v239_v30  ;;  %v392_v49 = vadd.f32 %v321_v29, %v240_v31  ;;  %v393_v57 = vadd.f32 %v321_v29, %v241_v32  ;;  %v130_v30 = vld [vmem:[#allocation2 + $0x328] sm:$0xff]  ;;  %v131_v31 = vld [vmem:[#allocation2 + $0x330] sm:$0xff] }
  0xb0   :  { %506 = vst [vmem:[#allocation5 + $0x168] sm:$0xff] %v378_v15  ;;  %507 = vst [vmem:[#allocation5 + $0x170] sm:$0xff] %v379_v3  ;;  %v394_v58 = vadd.f32 %v321_v29, %v242_v33  ;;  %v395_v9 = vadd.f32 %v321_v29, %v243_v47  ;;  %v396_v10 = vadd.f32 %v321_v29, %v244_v48  ;;  %v129_v29 = vld [vmem:[#allocation2 + $0x320] sm:$0xff]  ;;  %v132_v32 = vld [vmem:[#allocation2 + $0x338] sm:$0xff] }
  0xb1   :  { %508 = vst [vmem:[#allocation5 + $0x178] sm:$0xff] %v380_v11  ;;  %509 = vst [vmem:[#allocation5 + $0x180] sm:$0xff] %v381_v39  ;;  %v333_v7 = vadd.f32 %v861_v0, %v728_v34  ;;  %v334_v8 = vadd.f32 %v861_v0, %v731_v35  ;;  %v335_v50 = vadd.f32 %v861_v0, %v734_v36  ;;  %v1118_v33 = vld [vmem:[#allocation15_spill] sm:$0xff]  ;;  %v1119_v48 = vld [vmem:[#allocation16_spill] sm:$0xff] }
  0xb2   :  { %510 = vst [vmem:[#allocation5 + $0x188] sm:$0xff] %v382_v40  ;;  %511 = vst [vmem:[#allocation5 + $0x190] sm:$0xff] %v383_v38  ;;  %v336_v60 = vadd.f32 %v861_v0, %v737_v37  ;;  %v337_v61 = vadd.f32 %v861_v0, %v742_v43  ;;  %v338_v62 = vadd.f32 %v861_v0, %v745_v44  ;;  %v133_v18 = vld [vmem:[#allocation2 + $0x340] sm:$0xff]  ;;  %v134_v16 = vld [vmem:[#allocation2 + $0x348] sm:$0xff] }
  0xb3   :  { %512 = vst [vmem:[#allocation5 + $0x198] sm:$0xff] %v384_v27  ;;  %513 = vst [vmem:[#allocation5 + $0x1a0] sm:$0xff] %v385_v23  ;;  %v339_v34 = vadd.f32 %v861_v0, %v748_v45  ;;  %v340_v35 = vadd.f32 %v861_v0, %v751_v46  ;;  %v341_v36 = vadd.f32 %v861_v0, %v754_v51  ;;  %v1112_v46 = vld [vmem:[#allocation9_spill] sm:$0xff]  ;;  %v135_v15 = vld [vmem:[#allocation2 + $0x350] sm:$0xff] }
  0xb4   :  { %514 = vst [vmem:[#allocation5 + $0x1a8] sm:$0xff] %v386_v2  ;;  %515 = vst [vmem:[#allocation5 + $0x1b0] sm:$0xff] %v387_v41  ;;  %v342_v37 = vadd.f32 %v861_v0, %v757_v52  ;;  %v343_v4 = vadd.f32 %v861_v0, %v760_v53  ;;  %v344_v43 = vadd.f32 %v861_v0, %v763_v54  ;;  %v1113_v52 = vld [vmem:[#allocation10_spill] sm:$0xff]  ;;  %v125_v53 = vld [vmem:[#allocation2 + $0x300] sm:$0xff] }
  0xb5   :  { %516 = vst [vmem:[#allocation5 + $0x1b8] sm:$0xff] %v388_v1  ;;  %517 = vst [vmem:[#allocation5 + $0x1c0] sm:$0xff] %v389_v63  ;;  %v345_v44 = vadd.f32 %v861_v0, %v766_v55  ;;  %v346_v45 = vadd.f32 %v861_v0, %v769_v56  ;;  %v347_v51 = vadd.f32 %v861_v0, %v1112_v46  ;;  %v126_v54 = vld [vmem:[#allocation2 + $0x308] sm:$0xff]  ;;  %v1122_v3 = vld [vmem:[#allocation19_spill] sm:$0xff] }
  0xb6   :  { %518 = vst [vmem:[#allocation5 + $0x1c8] sm:$0xff] %v390_v17  ;;  %519 = vst [vmem:[#allocation5 + $0x1d0] sm:$0xff] %v391_v42  ;;  %v348_v5 = vadd.f32 %v861_v0, %v1113_v52  ;;  %v349_v55 = vadd.f32 %v861_v0, %v1114_v13  ;;  %v350_v56 = vadd.f32 %v861_v0, %v1115_v14  ;;  %v1123_v39 = vld [vmem:[#allocation20_spill] sm:$0xff]  ;;  %v1124_v38 = vld [vmem:[#allocation21_spill] sm:$0xff] }
  0xb7   :  { %520 = vst [vmem:[#allocation5 + $0x1d8] sm:$0xff] %v392_v49  ;;  %521 = vst [vmem:[#allocation5 + $0x1e0] sm:$0xff] %v393_v57  ;;  %v351_v20 = vadd.f32 %v861_v0, %v1116_v19  ;;  %v352_v28 = vadd.f32 %v861_v0, %v1117_v21  ;;  %v353_v47 = vadd.f32 %v861_v0, %v1118_v33  ;;  %v1125_v23 = vld [vmem:[#allocation22_spill] sm:$0xff]  ;;  %v136_v41 = vld [vmem:[#allocation2 + $0x358] sm:$0xff] }
  0xb8   :  { %522 = vst [vmem:[#allocation5 + $0x1e8] sm:$0xff] %v394_v58  ;;  %523 = vst [vmem:[#allocation5 + $0x1f0] sm:$0xff] %v395_v9  ;;  %v354_v25 = vadd.f32 %v861_v0, %v1119_v48  ;;  %v355_v24 = vadd.f32 %v861_v0, %v1120_v26  ;;  %v356_v22 = vadd.f32 %v861_v0, %v1121_v59  ;;  %v137_v1 = vld [vmem:[#allocation2 + $0x360] sm:$0xff]  ;;  %v138_v63 = vld [vmem:[#allocation2 + $0x368] sm:$0xff] }
  0xb9   :  { %524 = vst [vmem:[#allocation5 + $0x1f8] sm:$0xff] %v396_v10  ;;  %461 = vst [vmem:[#allocation5] sm:$0xff] %v333_v7  ;;  %v357_v11 = vadd.f32 %v861_v0, %v1122_v3  ;;  %v358_v40 = vadd.f32 %v861_v0, %v1123_v39  ;;  %v359_v27 = vadd.f32 %v861_v0, %v1124_v38  ;;  %v1126_v17 = vld [vmem:[#allocation23_spill] sm:$0xff]  ;;  %v1127_v49 = vld [vmem:[#allocation24_spill] sm:$0xff] }
  0xba   :  { %462 = vst [vmem:[#allocation5 + $0x8] sm:$0xff] %v334_v8  ;;  %463 = vst [vmem:[#allocation5 + $0x10] sm:$0xff] %v335_v50  ;;  %v360_v2 = vadd.f32 %v861_v0, %v1125_v23  ;;  %v361_v42 = vadd.f32 %v861_v0, %v1126_v17  ;;  %v362_v57 = vadd.f32 %v861_v0, %v1127_v49  ;;  %v1128_v58 = vld [vmem:[#allocation25_spill] sm:$0xff]  ;;  %v1129_v10 = vld [vmem:[#allocation26_spill] sm:$0xff] }
  0xbb   :  { %464 = vst [vmem:[#allocation5 + $0x18] sm:$0xff] %v336_v60  ;;  %465 = vst [vmem:[#allocation5 + $0x20] sm:$0xff] %v337_v61  ;;  %v363_v9 = vadd.f32 %v861_v0, %v1128_v58  ;;  %v364_v7 = vadd.f32 %v861_v0, %v1129_v10  ;;  %v139_v8 = vld [vmem:[#allocation2 + $0x370] sm:$0xff]  ;;  %v140_v50 = vld [vmem:[#allocation2 + $0x378] sm:$0xff] }
  0xbc   :  { %466 = vst [vmem:[#allocation5 + $0x28] sm:$0xff] %v338_v62  ;;  %467 = vst [vmem:[#allocation5 + $0x30] sm:$0xff] %v339_v34  ;;  %v141_v60 = vld [vmem:[#allocation2 + $0x380] sm:$0xff]  ;;  %v142_v61 = vld [vmem:[#allocation2 + $0x388] sm:$0xff] }
  0xbd   :  { %468 = vst [vmem:[#allocation5 + $0x38] sm:$0xff] %v340_v35  ;;  %469 = vst [vmem:[#allocation5 + $0x40] sm:$0xff] %v341_v36  ;;  %v143_v62 = vld [vmem:[#allocation2 + $0x390] sm:$0xff]  ;;  %v144_v34 = vld [vmem:[#allocation2 + $0x398] sm:$0xff] }
  0xbe   :  { %470 = vst [vmem:[#allocation5 + $0x48] sm:$0xff] %v342_v37  ;;  %471 = vst [vmem:[#allocation5 + $0x50] sm:$0xff] %v343_v4  ;;  %v1130_v35 = vld [vmem:[#allocation27_spill] sm:$0xff] }
  0xbf   :  { %472 = vst [vmem:[#allocation5 + $0x58] sm:$0xff] %v344_v43  ;;  %473 = vst [vmem:[#allocation5 + $0x60] sm:$0xff] %v345_v44  ;;  %v277_v36 = vmul.f32 %v1130_v35, %v125_v53  ;;  %v278_v37 = vmul.f32 %v1130_v35, %v126_v54  ;;  %v279_v0 = vmul.f32 %v1130_v35, %v127_v6  ;;  %v145_v43 = vld [vmem:[#allocation2 + $0x3a0] sm:$0xff]  ;;  %v146_v44 = vld [vmem:[#allocation2 + $0x3a8] sm:$0xff] }
  0xc0   :  { %474 = vst [vmem:[#allocation5 + $0x68] sm:$0xff] %v346_v45  ;;  %475 = vst [vmem:[#allocation5 + $0x70] sm:$0xff] %v347_v51  ;;  %v280_v4 = vmul.f32 %v1130_v35, %v128_v12  ;;  %v147_v45 = vld [vmem:[#allocation2 + $0x3b0] sm:$0xff]  ;;  %v281_v46 = vmul.f32 %v1130_v35, %v129_v29  ;;  %v282_v51 = vmul.f32 %v1130_v35, %v130_v30  ;;  %v148_v53 = vld [vmem:[#allocation2 + $0x3b8] sm:$0xff] }
  0xc1   :  { %476 = vst [vmem:[#allocation5 + $0x78] sm:$0xff] %v348_v5  ;;  %477 = vst [vmem:[#allocation5 + $0x80] sm:$0xff] %v349_v55  ;;  %v283_v52 = vmul.f32 %v1130_v35, %v131_v31  ;;  %v284_v5 = vmul.f32 %v1130_v35, %v132_v32  ;;  %v149_v54 = vld [vmem:[#allocation2 + $0x3c0] sm:$0xff]  ;;  %v150_v6 = vld [vmem:[#allocation2 + $0x3c8] sm:$0xff]  ;;  %v285_v12 = vmul.f32 %v1130_v35, %v133_v18 }
  0xc2   :  { %478 = vst [vmem:[#allocation5 + $0x88] sm:$0xff] %v350_v56  ;;  %479 = vst [vmem:[#allocation5 + $0x90] sm:$0xff] %v351_v20  ;;  %v286_v13 = vmul.f32 %v1130_v35, %v134_v16  ;;  %v287_v55 = vmul.f32 %v1130_v35, %v135_v15  ;;  %v288_v14 = vmul.f32 %v1130_v35, %v136_v41  ;;  %v151_v56 = vld [vmem:[#allocation2 + $0x3d0] sm:$0xff]  ;;  %v152_v19 = vld [vmem:[#allocation2 + $0x3d8] sm:$0xff] }
  0xc3   :  { %480 = vst [vmem:[#allocation5 + $0x98] sm:$0xff] %v352_v28  ;;  %481 = vst [vmem:[#allocation5 + $0xa0] sm:$0xff] %v353_v47  ;;  %v153_v20 = vld [vmem:[#allocation2 + $0x3e0] sm:$0xff]  ;;  %v289_v21 = vmul.f32 %v1130_v35, %v137_v1  ;;  %v290_v28 = vmul.f32 %v1130_v35, %v138_v63  ;;  %v291_v29 = vmul.f32 %v1130_v35, %v139_v8  ;;  %v154_v31 = vld [vmem:[#allocation2 + $0x3e8] sm:$0xff] }
  0xc4   :  { %482 = vst [vmem:[#allocation5 + $0xa8] sm:$0xff] %v354_v25  ;;  %483 = vst [vmem:[#allocation5 + $0xb0] sm:$0xff] %v355_v24  ;;  %v292_v30 = vmul.f32 %v1130_v35, %v140_v50  ;;  %v155_v32 = vld [vmem:[#allocation2 + $0x3f0] sm:$0xff]  ;;  %v156_v33 = vld [vmem:[#allocation2 + $0x3f8] sm:$0xff]  ;;  %v293_v47 = vmul.f32 %v1130_v35, %v141_v60  ;;  %v294_v48 = vmul.f32 %v1130_v35, %v142_v61  ;;  %v947_v24 = vpop.permute.xlu1 %330 }
  0xc5   :  { %484 = vst [vmem:[#allocation5 + $0xb8] sm:$0xff] %v356_v22  ;;  %485 = vst [vmem:[#allocation5 + $0xc0] sm:$0xff] %v357_v11  ;;  %v295_v25 = vmul.f32 %v1130_v35, %v143_v62  ;;  %v296_v26 = vmul.f32 %v1130_v35, %v144_v34  ;;  %v297_v59 = vmul.f32 %v1130_v35, %v145_v43  ;;  %v93_v62 = vld [vmem:[#allocation2 + $0x200] sm:$0xff]  ;;  %v94_v34 = vld [vmem:[#allocation2 + $0x208] sm:$0xff] }
  0xc6   :  { %486 = vst [vmem:[#allocation5 + $0xc8] sm:$0xff] %v358_v40  ;;  %487 = vst [vmem:[#allocation5 + $0xd0] sm:$0xff] %v359_v27  ;;  %v298_v22 = vmul.f32 %v1130_v35, %v146_v44  ;;  %v299_v18 = vmul.f32 %v1130_v35, %v147_v45  ;;  %v300_v16 = vmul.f32 %v1130_v35, %v148_v53  ;;  %v97_v44 = vld [vmem:[#allocation2 + $0x220] sm:$0xff]  ;;  %v98_v45 = vld [vmem:[#allocation2 + $0x228] sm:$0xff] }
  0xc7   :  { %488 = vst [vmem:[#allocation5 + $0xd8] sm:$0xff] %v360_v2  ;;  %489 = vst [vmem:[#allocation5 + $0xe0] sm:$0xff] %v361_v42  ;;  %v301_v15 = vmul.f32 %v1130_v35, %v149_v54  ;;  %v302_v3 = vmul.f32 %v1130_v35, %v150_v6  ;;  %v303_v11 = vmul.f32 %v1130_v35, %v151_v56  ;;  %v101_v6 = vld [vmem:[#allocation2 + $0x240] sm:$0xff] }
  0xc8   :  { %490 = vst [vmem:[#allocation5 + $0xe8] sm:$0xff] %v362_v57  ;;  %491 = vst [vmem:[#allocation5 + $0xf0] sm:$0xff] %v363_v9  ;;  %v304_v39 = vmul.f32 %v1130_v35, %v152_v19  ;;  %v958_v40 = vmul.f32 %v1130_v35, %v153_v20  ;;  %v961_v38 = vmul.f32 %v1130_v35, %v154_v31  ;;  %v104_v20 = vld [vmem:[#allocation2 + $0x258] sm:$0xff] }
  0xc9   :  { %492 = vst [vmem:[#allocation5 + $0xf8] sm:$0xff] %v364_v7  ;;  %v964_v27 = vmul.f32 %v1130_v35, %v155_v32  ;;  %v967_v23 = vmul.f32 %v1130_v35, %v156_v33  ;;  %v429_v2 = vadd.f32 %v947_v24, %v277_v36  ;;  %v430_v41 = vadd.f32 %v947_v24, %v278_v37  ;;  %v95_v35 = vld [vmem:[#allocation2 + $0x210] sm:$0xff]  ;;  %v96_v36 = vld [vmem:[#allocation2 + $0x218] sm:$0xff] }
  0xca   :  { %v431_v1 = vadd.f32 %v947_v24, %v279_v0  ;;  %v432_v63 = vadd.f32 %v947_v24, %v280_v4  ;;  %v433_v17 = vadd.f32 %v947_v24, %v281_v46  ;;  %v434_v42 = vadd.f32 %v947_v24, %v282_v51  ;;  %v99_v46 = vld [vmem:[#allocation2 + $0x230] sm:$0xff]  ;;  %v100_v51 = vld [vmem:[#allocation2 + $0x238] sm:$0xff] }
  0xcb   :  { %v435_v49 = vadd.f32 %v947_v24, %v283_v52  ;;  %v436_v57 = vadd.f32 %v947_v24, %v284_v5  ;;  %v437_v58 = vadd.f32 %v947_v24, %v285_v12  ;;  %v438_v9 = vadd.f32 %v947_v24, %v286_v13  ;;  %557 = vst [vmem:[#allocation5 + $0x300] sm:$0xff] %v429_v2  ;;  %v102_v12 = vld [vmem:[#allocation2 + $0x248] sm:$0xff]  ;;  %v103_v13 = vld [vmem:[#allocation2 + $0x250] sm:$0xff]  ;;  %v116_v2 = vld [vmem:[#allocation2 + $0x2b8] sm:$0xff] }
  0xcc   :  { %v439_v10 = vadd.f32 %v947_v24, %v287_v55  ;;  %v440_v7 = vadd.f32 %v947_v24, %v288_v14  ;;  %558 = vst [vmem:[#allocation5 + $0x308] sm:$0xff] %v430_v41  ;;  %559 = vst [vmem:[#allocation5 + $0x310] sm:$0xff] %v431_v1  ;;  %v441_v8 = vadd.f32 %v947_v24, %v289_v21  ;;  %v105_v21 = vld [vmem:[#allocation2 + $0x260] sm:$0xff]  ;;  %v107_v33 = vld [vmem:[#allocation2 + $0x270] sm:$0xff] }
  0xcd   :  { %560 = vst [vmem:[#allocation5 + $0x318] sm:$0xff] %v432_v63  ;;  %v442_v50 = vadd.f32 %v947_v24, %v290_v28  ;;  %v443_v60 = vadd.f32 %v947_v24, %v291_v29  ;;  %v444_v61 = vadd.f32 %v947_v24, %v292_v30  ;;  %561 = vst [vmem:[#allocation5 + $0x320] sm:$0xff] %v433_v17  ;;  %v106_v28 = vld [vmem:[#allocation2 + $0x268] sm:$0xff]  ;;  %v117_v41 = vld [vmem:[#allocation2 + $0x2c0] sm:$0xff] }
  0xce   :  { %562 = vst [vmem:[#allocation5 + $0x328] sm:$0xff] %v434_v42  ;;  %563 = vst [vmem:[#allocation5 + $0x330] sm:$0xff] %v435_v49  ;;  %v445_v37 = vadd.f32 %v947_v24, %v293_v47  ;;  %v446_v0 = vadd.f32 %v947_v24, %v294_v48  ;;  %v447_v4 = vadd.f32 %v947_v24, %v295_v25  ;;  %v108_v47 = vld [vmem:[#allocation2 + $0x278] sm:$0xff]  ;;  %v109_v48 = vld [vmem:[#allocation2 + $0x280] sm:$0xff] }
  0xcf   :  { %564 = vst [vmem:[#allocation5 + $0x338] sm:$0xff] %v436_v57  ;;  %v448_v43 = vadd.f32 %v947_v24, %v296_v26  ;;  %565 = vst [vmem:[#allocation5 + $0x340] sm:$0xff] %v437_v58  ;;  %v449_v52 = vadd.f32 %v947_v24, %v297_v59  ;;  %v450_v5 = vadd.f32 %v947_v24, %v298_v22  ;;  %v110_v25 = vld [vmem:[#allocation2 + $0x288] sm:$0xff]  ;;  %v111_v26 = vld [vmem:[#allocation2 + $0x290] sm:$0xff] }
  0xd0   :  { %566 = vst [vmem:[#allocation5 + $0x348] sm:$0xff] %v438_v9  ;;  %567 = vst [vmem:[#allocation5 + $0x350] sm:$0xff] %v439_v10  ;;  %v451_v53 = vadd.f32 %v947_v24, %v299_v18  ;;  %v452_v54 = vadd.f32 %v947_v24, %v300_v16  ;;  %v453_v55 = vadd.f32 %v947_v24, %v301_v15  ;;  %v112_v59 = vld [vmem:[#allocation2 + $0x298] sm:$0xff]  ;;  %v1131_v22 = vld [vmem:[#allocation8_spill] sm:$0xff] }
  0xd1   :  { %568 = vst [vmem:[#allocation5 + $0x358] sm:$0xff] %v440_v7  ;;  %569 = vst [vmem:[#allocation5 + $0x360] sm:$0xff] %v441_v8  ;;  %v454_v14 = vadd.f32 %v947_v24, %v302_v3  ;;  %v455_v56 = vadd.f32 %v947_v24, %v303_v11  ;;  %v456_v19 = vadd.f32 %v947_v24, %v304_v39  ;;  %v113_v3 = vld [vmem:[#allocation2 + $0x2a0] sm:$0xff]  ;;  %v114_v11 = vld [vmem:[#allocation2 + $0x2a8] sm:$0xff] }
  0xd2   :  { %570 = vst [vmem:[#allocation5 + $0x368] sm:$0xff] %v442_v50  ;;  %571 = vst [vmem:[#allocation5 + $0x370] sm:$0xff] %v443_v60  ;;  %v457_v29 = vadd.f32 %v947_v24, %v958_v40  ;;  %v458_v30 = vadd.f32 %v947_v24, %v961_v38  ;;  %v459_v31 = vadd.f32 %v947_v24, %v964_v27  ;;  %v115_v39 = vld [vmem:[#allocation2 + $0x2b0] sm:$0xff]  ;;  %v118_v1 = vld [vmem:[#allocation2 + $0x2c8] sm:$0xff] }
  0xd3   :  { %572 = vst [vmem:[#allocation5 + $0x378] sm:$0xff] %v444_v61  ;;  %573 = vst [vmem:[#allocation5 + $0x380] sm:$0xff] %v445_v37  ;;  %v460_v32 = vadd.f32 %v947_v24, %v967_v23  ;;  %v245_v18 = vmul.f32 %v1131_v22, %v93_v62  ;;  %v246_v16 = vmul.f32 %v1131_v22, %v94_v34  ;;  %v119_v57 = vld [vmem:[#allocation2 + $0x2d0] sm:$0xff]  ;;  %v120_v58 = vld [vmem:[#allocation2 + $0x2d8] sm:$0xff] }
  0xd4   :  { %574 = vst [vmem:[#allocation5 + $0x388] sm:$0xff] %v446_v0  ;;  %575 = vst [vmem:[#allocation5 + $0x390] sm:$0xff] %v447_v4  ;;  %v247_v24 = vmul.f32 %v1131_v22, %v95_v35  ;;  %v248_v15 = vmul.f32 %v1131_v22, %v96_v36  ;;  %v249_v40 = vmul.f32 %v1131_v22, %v97_v44  ;;  %v121_v9 = vld [vmem:[#allocation2 + $0x2e0] sm:$0xff]  ;;  %v122_v60 = vld [vmem:[#allocation2 + $0x2e8] sm:$0xff]  ;;  %v1025_v0 = vpop.permute.xlu0 %325 }
  0xd5   :  { %576 = vst [vmem:[#allocation5 + $0x398] sm:$0xff] %v448_v43  ;;  %577 = vst [vmem:[#allocation5 + $0x3a0] sm:$0xff] %v449_v52  ;;  %v250_v38 = vmul.f32 %v1131_v22, %v98_v45  ;;  %v251_v27 = vmul.f32 %v1131_v22, %v99_v46  ;;  %v252_v23 = vmul.f32 %v1131_v22, %v100_v51  ;;  %v123_v61 = vld [vmem:[#allocation2 + $0x2f0] sm:$0xff]  ;;  %v124_v62 = vld [vmem:[#allocation2 + $0x2f8] sm:$0xff] }
  0xd6   :  { %578 = vst [vmem:[#allocation5 + $0x3a8] sm:$0xff] %v450_v5  ;;  %579 = vst [vmem:[#allocation5 + $0x3b0] sm:$0xff] %v451_v53  ;;  %v253_v63 = vmul.f32 %v1131_v22, %v101_v6  ;;  %v254_v17 = vmul.f32 %v1131_v22, %v102_v12  ;;  %v255_v42 = vmul.f32 %v1131_v22, %v103_v13 }
  0xd7   :  { %580 = vst [vmem:[#allocation5 + $0x3b8] sm:$0xff] %v452_v54  ;;  %581 = vst [vmem:[#allocation5 + $0x3c0] sm:$0xff] %v453_v55  ;;  %v256_v49 = vmul.f32 %v1131_v22, %v104_v20  ;;  %v257_v10 = vmul.f32 %v1131_v22, %v105_v21  ;;  %v258_v7 = vmul.f32 %v1131_v22, %v106_v28 }
  0xd8   :  { %582 = vst [vmem:[#allocation5 + $0x3c8] sm:$0xff] %v454_v14  ;;  %583 = vst [vmem:[#allocation5 + $0x3d0] sm:$0xff] %v455_v56  ;;  %v259_v8 = vmul.f32 %v1131_v22, %v107_v33  ;;  %v260_v50 = vmul.f32 %v1131_v22, %v108_v47  ;;  %v261_v34 = vmul.f32 %v1131_v22, %v109_v48 }
  0xd9   :  { %584 = vst [vmem:[#allocation5 + $0x3d8] sm:$0xff] %v456_v19  ;;  %585 = vst [vmem:[#allocation5 + $0x3e0] sm:$0xff] %v457_v29  ;;  %v262_v35 = vmul.f32 %v1131_v22, %v110_v25  ;;  %v263_v36 = vmul.f32 %v1131_v22, %v111_v26  ;;  %v264_v37 = vmul.f32 %v1131_v22, %v112_v59 }
  0xda   :  { %586 = vst [vmem:[#allocation5 + $0x3e8] sm:$0xff] %v458_v30  ;;  %587 = vst [vmem:[#allocation5 + $0x3f0] sm:$0xff] %v459_v31  ;;  %v265_v4 = vmul.f32 %v1131_v22, %v113_v3  ;;  %v266_v43 = vmul.f32 %v1131_v22, %v114_v11  ;;  %v267_v44 = vmul.f32 %v1131_v22, %v115_v39 }
  0xdb   :  { %588 = vst [vmem:[#allocation5 + $0x3f8] sm:$0xff] %v460_v32  ;;  %v268_v45 = vmul.f32 %v1131_v22, %v116_v2  ;;  %v269_v46 = vmul.f32 %v1131_v22, %v117_v41  ;;  %v270_v51 = vmul.f32 %v1131_v22, %v118_v1  ;;  %v271_v52 = vmul.f32 %v1131_v22, %v119_v57 }
  0xdc   :  { %v272_v5 = vmul.f32 %v1131_v22, %v120_v58  ;;  %v273_v53 = vmul.f32 %v1131_v22, %v121_v9  ;;  %v274_v54 = vmul.f32 %v1131_v22, %v122_v60  ;;  %v275_v6 = vmul.f32 %v1131_v22, %v123_v61 }
  0xdd   :  { %v276_v12 = vmul.f32 %v1131_v22, %v124_v62  ;;  %v397_v13 = vadd.f32 %v1025_v0, %v245_v18  ;;  %v398_v55 = vadd.f32 %v1025_v0, %v246_v16  ;;  %v399_v14 = vadd.f32 %v1025_v0, %v247_v24 }
  0xde   :  { %v400_v56 = vadd.f32 %v1025_v0, %v248_v15  ;;  %v401_v19 = vadd.f32 %v1025_v0, %v249_v40  ;;  %v402_v20 = vadd.f32 %v1025_v0, %v250_v38  ;;  %v403_v21 = vadd.f32 %v1025_v0, %v251_v27 }
  0xdf   :  { %v404_v28 = vadd.f32 %v1025_v0, %v252_v23  ;;  %v405_v29 = vadd.f32 %v1025_v0, %v253_v63  ;;  %v406_v30 = vadd.f32 %v1025_v0, %v254_v17  ;;  %v407_v31 = vadd.f32 %v1025_v0, %v255_v42  ;;  %525 = vst [vmem:[#allocation5 + $0x200] sm:$0xff] %v397_v13 }
  0xe0   :  { %v408_v32 = vadd.f32 %v1025_v0, %v256_v49  ;;  %526 = vst [vmem:[#allocation5 + $0x208] sm:$0xff] %v398_v55  ;;  %527 = vst [vmem:[#allocation5 + $0x210] sm:$0xff] %v399_v14  ;;  %v409_v33 = vadd.f32 %v1025_v0, %v257_v10  ;;  %v410_v47 = vadd.f32 %v1025_v0, %v258_v7 }
  0xe1   :  { %528 = vst [vmem:[#allocation5 + $0x218] sm:$0xff] %v400_v56  ;;  %v411_v48 = vadd.f32 %v1025_v0, %v259_v8  ;;  %v412_v25 = vadd.f32 %v1025_v0, %v260_v50  ;;  %529 = vst [vmem:[#allocation5 + $0x220] sm:$0xff] %v401_v19  ;;  %v413_v26 = vadd.f32 %v1025_v0, %v261_v34 }
  0xe2   :  { %530 = vst [vmem:[#allocation5 + $0x228] sm:$0xff] %v402_v20  ;;  %531 = vst [vmem:[#allocation5 + $0x230] sm:$0xff] %v403_v21  ;;  %v414_v59 = vadd.f32 %v1025_v0, %v262_v35  ;;  %v415_v22 = vadd.f32 %v1025_v0, %v263_v36  ;;  %v416_v18 = vadd.f32 %v1025_v0, %v264_v37 }
  0xe3   :  { %532 = vst [vmem:[#allocation5 + $0x238] sm:$0xff] %v404_v28  ;;  %533 = vst [vmem:[#allocation5 + $0x240] sm:$0xff] %v405_v29  ;;  %v417_v16 = vadd.f32 %v1025_v0, %v265_v4  ;;  %v418_v24 = vadd.f32 %v1025_v0, %v266_v43  ;;  %v419_v15 = vadd.f32 %v1025_v0, %v267_v44 }
  0xe4   :  { %534 = vst [vmem:[#allocation5 + $0x248] sm:$0xff] %v406_v30  ;;  %535 = vst [vmem:[#allocation5 + $0x250] sm:$0xff] %v407_v31  ;;  %v420_v3 = vadd.f32 %v1025_v0, %v268_v45  ;;  %v421_v11 = vadd.f32 %v1025_v0, %v269_v46  ;;  %v422_v39 = vadd.f32 %v1025_v0, %v270_v51 }
  0xe5   :  { %536 = vst [vmem:[#allocation5 + $0x258] sm:$0xff] %v408_v32  ;;  %537 = vst [vmem:[#allocation5 + $0x260] sm:$0xff] %v409_v33  ;;  %v423_v40 = vadd.f32 %v1025_v0, %v271_v52  ;;  %v424_v38 = vadd.f32 %v1025_v0, %v272_v5  ;;  %v425_v27 = vadd.f32 %v1025_v0, %v273_v53 }
  0xe6   :  { %538 = vst [vmem:[#allocation5 + $0x268] sm:$0xff] %v410_v47  ;;  %539 = vst [vmem:[#allocation5 + $0x270] sm:$0xff] %v411_v48  ;;  %v426_v23 = vadd.f32 %v1025_v0, %v274_v54  ;;  %v427_v2 = vadd.f32 %v1025_v0, %v275_v6  ;;  %v428_v41 = vadd.f32 %v1025_v0, %v276_v12 }
  0xe7   :  { %540 = vst [vmem:[#allocation5 + $0x278] sm:$0xff] %v412_v25  ;;  %541 = vst [vmem:[#allocation5 + $0x280] sm:$0xff] %v413_v26 }
  0xe8   :  { %542 = vst [vmem:[#allocation5 + $0x288] sm:$0xff] %v414_v59  ;;  %543 = vst [vmem:[#allocation5 + $0x290] sm:$0xff] %v415_v22 }
  0xe9   :  { %544 = vst [vmem:[#allocation5 + $0x298] sm:$0xff] %v416_v18  ;;  %545 = vst [vmem:[#allocation5 + $0x2a0] sm:$0xff] %v417_v16 }
  0xea   :  { %546 = vst [vmem:[#allocation5 + $0x2a8] sm:$0xff] %v418_v24  ;;  %547 = vst [vmem:[#allocation5 + $0x2b0] sm:$0xff] %v419_v15 }
  0xeb   :  { %548 = vst [vmem:[#allocation5 + $0x2b8] sm:$0xff] %v420_v3  ;;  %549 = vst [vmem:[#allocation5 + $0x2c0] sm:$0xff] %v421_v11 }
  0xec   :  { %550 = vst [vmem:[#allocation5 + $0x2c8] sm:$0xff] %v422_v39  ;;  %551 = vst [vmem:[#allocation5 + $0x2d0] sm:$0xff] %v423_v40 }
  0xed   :  { %552 = vst [vmem:[#allocation5 + $0x2d8] sm:$0xff] %v424_v38  ;;  %553 = vst [vmem:[#allocation5 + $0x2e0] sm:$0xff] %v425_v27 }
  0xee   :  { %554 = vst [vmem:[#allocation5 + $0x2e8] sm:$0xff] %v426_v23  ;;  %555 = vst [vmem:[#allocation5 + $0x2f0] sm:$0xff] %v427_v2 }
  0xef   :  { %556 = vst [vmem:[#allocation5 + $0x2f8] sm:$0xff] %v428_v41 }
  0xf0   :  { %646 = shalt.err (!%p643_p12)
}
  0xf1   :  { %s647_s17 = scalar_lea.hbm %s1089_s3, 16384 }
  0xf2   :  { %p648_p13 = scmp.ne.s32.totalorder %s1089_s3, %s647_s17  ;;  %p651_p0 = scmp.lt.u32.totalorder %s647_s17, %s1089_s3 }
  0xf4   :  { %p653_p1 = pnand %p651_p0, %p648_p13 }
  0xf6   :  { %656 = shalt.err (!%p653_p1)
}
  0xf7   :  { %600 = dma.vmem_to_hbm [thread:$0]  %s595_s2, 16384, %s1089_s3, [#allocation4], %s662_s22, %s662_s22, %s663_s23  }
  0xf8   :  { %659 = dma.done.wait [#allocation4], 16384  }
  0xf9   :  { %660 = vsyncadd [#allocation4], 4294950912 }
  0xfa   :  { %604 = vsyncpa [#allocation3], 1 }
  0xfb   :  { %605 = vsyncpa [#allocation4], 1 }

</bundles_post_ra>
